<compile_context>
chip_gen: v6e
topology: v6e:2x2x1
jax: 0.10.0
libtpu: 0.0.40
codegen_flags: <defaults>
</compile_context>

<pallas_src>
import functools

import jax
import jax.numpy as jnp
from jax.experimental import pallas as pl
from jax.experimental.pallas import tpu as pltpu


def _round_up(n, m):
    return ((n + m - 1) // m) * m


# ----------------------------------------------------------------------------
# Kernel 1: projection matmul (bf16 operands, f32 accumulation, full-K single dot)
#   outputs: bf16 features [tm, f_pad]  +  f32 attention linear terms [tm, 16]
# ----------------------------------------------------------------------------
def _proj_matmul_kernel(a_ref, b_ref, feat_ref, alpha_ref, *, f_pad):
    acc = jnp.dot(a_ref[...], b_ref[...], preferred_element_type=jnp.float32)
    feat_ref[...] = acc[:, :f_pad].astype(feat_ref.dtype)            # lane-dense bf16 store
    alpha_ref[...] = acc[:, f_pad:f_pad + alpha_ref.shape[-1]]       # 16 f32 att columns


def _proj_matmul(a, b, f_pad, alpha_cols=16):
    m, k = a.shape
    _, n = b.shape
    # full K and full N (256) per tile feeds the 256-wide MXU on v6e/v7x; tm as large
    # as divisibility allows (m is always a multiple of 128).
    tm = 512 if m % 512 == 0 else (256 if m % 256 == 0 else 128)
    return pl.pallas_call(
        functools.partial(_proj_matmul_kernel, f_pad=f_pad),
        out_shape=(jax.ShapeDtypeStruct((m, f_pad), jnp.bfloat16),
                   jax.ShapeDtypeStruct((m, alpha_cols), jnp.float32)),
        grid=(m // tm,),
        in_specs=[pl.BlockSpec((tm, k), lambda i: (i, 0)),
                  pl.BlockSpec((k, n), lambda i: (0, 0))],
        out_specs=(pl.BlockSpec((tm, f_pad), lambda i: (i, 0)),
                   pl.BlockSpec((tm, alpha_cols), lambda i: (i, 0))),
        compiler_params=pltpu.CompilerParams(
            dimension_semantics=("parallel",),
            vmem_limit_bytes=32 * 1024 * 1024),
    )(a, b)


# ----------------------------------------------------------------------------
# Kernel 2: GAT attention + aggregation (online softmax over source tiles)
# ----------------------------------------------------------------------------
def _gat_attn_kernel(occ_ref, xs_ref, asrc_ref, adst_ref, adj_ref, b_ref, out_ref,
                     acc_ref, m_ref, l_ref, *,
                     heads, c_pad, n_k, apply_elu, log_softmax_cols):
    f32 = jnp.float32
    NEG = jnp.float32(-1e30)              # finite: no inf/NaN propagation
    i = pl.program_id(0)
    k = pl.program_id(1)

    @pl.when(k == 0)
    def _init():
        acc_ref[...] = jnp.zeros_like(acc_ref)
        m_ref[...] = jnp.full_like(m_ref, NEG)
        l_ref[...] = jnp.zeros_like(l_ref)

    # Skip the whole tile if the adjacency block has no edges (scalar-prefetched occupancy).
    @pl.when(occ_ref[i * n_k + k] != 0)
    def _compute():
        td_blk = acc_ref.shape[0]
        # additive mask: 0 where edge, -1e30 where no edge; built once per tile,
        # replaces two per-head selects (masked entries underflow to 0 in exp).
        mask_bias = (adj_ref[...].astype(f32) - 1.0) * 1e30          # [TD, TS]
        a_d = adst_ref[...]                                          # [TD, H]  f32
        a_s = asrc_ref[...]                                          # [H, TS]  f32
        xs = xs_ref[...]                                             # [TS, F_pad] bf16
        m_prev = m_ref[...]                                          # [TD, H]
        l_prev = l_ref[...]                                          # [TD, H]

        m_cols, l_cols, corr_cols, delta_cols = [], [], [], []
        for h in range(heads):                                       # static unroll, H in {8, 1}
            logits = a_d[:, h:h + 1] + a_s[h:h + 1, :]               # [TD, TS]
            logits = jnp.maximum(logits, 0.2 * logits)               # LeakyReLU(0.2)
            logits = logits + mask_bias
            m_p = m_prev[:, h:h + 1]
            m_n = jnp.maximum(m_p, jnp.max(logits, axis=1, keepdims=True))
            corr = jnp.exp(m_p - m_n)                                # <= 1, finite
            p = jnp.exp(logits - m_n)                                # masked -> 0 by underflow
            l_cols.append(corr * l_prev[:, h:h + 1] +
                          jnp.sum(p, axis=1, keepdims=True))
            delta_cols.append(jnp.dot(p.astype(jnp.bfloat16),
                                      xs[:, h * c_pad:(h + 1) * c_pad],
                                      preferred_element_type=f32))   # [TD, c_pad]
            m_cols.append(m_n)
            corr_cols.append(jnp.broadcast_to(corr, (td_blk, c_pad)))

        # single lane-dense RMW on the accumulator; dense m/l stores
        delta = jnp.concatenate(delta_cols, axis=1)                  # [TD, F_pad]
        corr_all = jnp.concatenate(corr_cols, axis=1)                # [TD, F_pad]
        acc_ref[...] = corr_all * acc_ref[...] + delta
        m_ref[...] = jnp.concatenate(m_cols, axis=1)
        l_ref[...] = jnp.concatenate(l_cols, axis=1)

    @pl.when(k == n_k - 1)
    def _finalize():
        td_blk, f_pad = out_ref.shape
        inv_cols = jnp.concatenate(
            [jnp.broadcast_to(
                pl.reciprocal(jnp.maximum(l_ref[:, h:h + 1], 1e-20), approx=True),
                (td_blk, c_pad)) for h in range(heads)], axis=1)     # [TD, F_pad]
        out = acc_ref[...] * inv_cols + b_ref[...]                   # [TD, F_pad]
        if apply_elu:
            out = jnp.where(out > 0, out, jnp.exp(jnp.minimum(out, 0.0)) - 1.0)
        if log_softmax_cols is not None:
            col = jax.lax.broadcasted_iota(jnp.int32, (td_blk, f_pad), 1)
            valid = col < log_softmax_cols
            xm = jnp.where(valid, out, NEG)
            mx = jnp.max(xm, axis=1, keepdims=True)
            lse = jnp.log(jnp.sum(jnp.where(valid, jnp.exp(xm - mx), 0.0),
                                  axis=1, keepdims=True))
            out = out - mx - lse
        out_ref[...] = out.astype(out_ref.dtype)                     # single lane-dense store


# ----------------------------------------------------------------------------
# Layer wrapper
# ----------------------------------------------------------------------------
def gat_layer(x_src, res_n_id, adj, lp, *, apply_elu,
              log_softmax_cols=None, td=256, ts=512):
    heads, c_pad, f_pad, k_pad = lp["heads"], lp["c_pad"], lp["f_pad"], lp["k_pad"]
    ns, k_in = x_src.shape
    nd = adj.shape[0]
    # clamp tiles for small blocks (keeps padding low; large blocks get TD=256 / TS=512
    # so the src features are re-streamed half as often as with TD=128)
    td = td if nd >= td else _round_up(max(nd, 1), 128)
    ts = ts if ns >= ts else _round_up(max(ns, 1), 128)
    nd_pad = _round_up(nd, td)
    ns_pad = _round_up(ns, ts)

    # pad src features to [ns_pad, k_pad] bf16
    x_p = jnp.zeros((ns_pad, k_pad), jnp.bfloat16)
    x_p = x_p.at[:ns, :k_in].set(x_src.astype(jnp.bfloat16))

    # one projection matmul gives bf16 features + both f32 attention linear terms
    xs_feat, alpha = _proj_matmul(x_p, lp["w_aug"], f_pad)           # [ns_pad,f_pad], [ns_pad,16]
    alpha_src_t = alpha[:, :heads].T                                 # [heads, ns_pad]
    a_dst = alpha[res_n_id][:, 8:8 + heads]                          # dst is subset of src
    alpha_dst = jnp.zeros((nd_pad, heads), jnp.float32).at[:nd].set(a_dst)

    adj_p = jnp.zeros((nd_pad, ns_pad), jnp.int8)
    adj_p = adj_p.at[:nd, :ns].set(adj.astype(jnp.int8))

    # per-(dst tile, src tile) occupancy; empty tiles are skipped inside the kernel
    n_i, n_k = nd_pad // td, ns_pad // ts
    occ = (adj_p.astype(jnp.int32).reshape(n_i, td, n_k, ts).sum(axis=(1, 3)) > 0)
    occ = occ.astype(jnp.int32).reshape(-1)                          # 1-D SMEM table

    kernel = functools.partial(_gat_attn_kernel, heads=heads, c_pad=c_pad, n_k=n_k,
                               apply_elu=apply_elu,
                               log_softmax_cols=log_softmax_cols)
    out = pl.pallas_call(
        kernel,
        out_shape=jax.ShapeDtypeStruct((nd_pad, f_pad), jnp.float32),
        grid_spec=pltpu.PrefetchScalarGridSpec(
            num_scalar_prefetch=1,
            grid=(n_i, n_k),
            in_specs=[
                pl.BlockSpec((ts, f_pad), lambda i, k, occ: (k, 0)),   # projected src features
                pl.BlockSpec((heads, ts), lambda i, k, occ: (0, k)),   # alpha_src (heads x Ns)
                pl.BlockSpec((td, heads), lambda i, k, occ: (i, 0)),   # alpha_dst (Nd x heads)
                pl.BlockSpec((td, ts), lambda i, k, occ: (i, k)),      # int8 adjacency mask
                pl.BlockSpec((1, f_pad), lambda i, k, occ: (0, 0)),    # bias
            ],
            out_specs=pl.BlockSpec((td, f_pad), lambda i, k, occ: (i, 0)),
            scratch_shapes=[pltpu.VMEM((td, f_pad), jnp.float32),      # acc
                            pltpu.VMEM((td, heads), jnp.float32),      # running max
                            pltpu.VMEM((td, heads), jnp.float32)]),    # running denom
        compiler_params=pltpu.CompilerParams(
            dimension_semantics=("parallel", "arbitrary"),             # dst axis megacore-shardable
            vmem_limit_bytes=32 * 1024 * 1024),
    )(occ, xs_feat, alpha_src_t, alpha_dst, adj_p, lp["bias"])
    return out                                                        # [nd_pad, f_pad]


# ----------------------------------------------------------------------------
# Parameter preparation (pad + fold attention vectors into W)
# ----------------------------------------------------------------------------
def _prepare_gat_layer(w, att_src, att_dst, b, *, heads, c_real, k_pad, row_map):
    f32 = jnp.float32
    unit = 128 // heads
    c_pad = _round_up(c_real, unit)
    f_pad = heads * c_pad                                             # multiple of 128
    rm = jnp.asarray(row_map, jnp.int32)

    w_lay = jnp.zeros((k_pad, f_pad), f32)
    for h in range(heads):
        cols = h * c_pad + jnp.arange(c_real)
        w_lay = w_lay.at[rm[:, None], cols[None, :]].set(w[:, h * c_real:(h + 1) * c_real])

    w_as = jnp.zeros((k_pad, 8), f32)
    w_ad = jnp.zeros((k_pad, 8), f32)
    for h in range(heads):
        blk = w_lay[:, h * c_pad:h * c_pad + c_real]                  # [k_pad, c_real]
        w_as = w_as.at[:, h].set(blk @ att_src[h])
        w_ad = w_ad.at[:, h].set(blk @ att_dst[h])

    w_aug = jnp.concatenate(
        [w_lay, w_as, w_ad, jnp.zeros((k_pad, 112), f32)], axis=1)    # [k_pad, f_pad + 128]

    bias = jnp.zeros((1, f_pad), f32)
    for h in range(heads):
        bias = bias.at[0, h * c_pad:h * c_pad + c_real].set(b[0, h * c_real:(h + 1) * c_real])

    return {"w_aug": w_aug.astype(jnp.bfloat16), "bias": bias,
            "heads": heads, "c_real": c_real, "c_pad": c_pad,
            "f_pad": f_pad, "k_pad": k_pad}


def init_params(key, in_channels, out_channels):
    ks = jax.random.split(key, 8)
    f32 = jnp.float32
    w1 = 0.1 * jax.random.normal(ks[0], (in_channels, 8 * 8), f32)
    att_src1 = 0.1 * jax.random.normal(ks[1], (8, 8), f32)
    att_dst1 = 0.1 * jax.random.normal(ks[2], (8, 8), f32)
    b1 = 0.01 * jax.random.normal(ks[3], (1, 8 * 8), f32)
    w2 = 0.1 * jax.random.normal(ks[4], (8 * 8, out_channels), f32)
    att_src2 = 0.1 * jax.random.normal(ks[5], (1, out_channels), f32)
    att_dst2 = 0.1 * jax.random.normal(ks[6], (1, out_channels), f32)
    b2 = 0.01 * jax.random.normal(ks[7], (1, out_channels), f32)

    lp1 = _prepare_gat_layer(w1, att_src1, att_dst1, b1, heads=8, c_real=8,
                             k_pad=_round_up(in_channels, 128),
                             row_map=jnp.arange(in_channels, dtype=jnp.int32))
    # layer-2 logical input row h*8+c lives at physical column h*c_pad1 + c of layer-1 output
    idx = jnp.arange(8 * 8, dtype=jnp.int32)
    row_map2 = (idx // 8) * lp1["c_pad"] + (idx % 8)
    lp2 = _prepare_gat_layer(w2, att_src2, att_dst2, b2, heads=1, c_real=out_channels,
                             k_pad=lp1["f_pad"], row_map=row_map2)
    return {"layer1": lp1, "layer2": lp2}


# ----------------------------------------------------------------------------
# GATNet forward (glue in plain JAX: gathers, padding, param plumbing)
# ----------------------------------------------------------------------------
def gatnet_forward(params, x, data_flow):
    blk0, blk1 = data_flow
    lp1, lp2 = params["layer1"], params["layer2"]

    # block 0
    x = jnp.take(x, blk0["n_id"], axis=0)
    n1 = blk0["adj"].shape[0]
    h1 = gat_layer(x, blk0["res_n_id"], blk0["adj"], lp1, apply_elu=True)
    h1 = h1[:n1]                                   # real dst rows, padded-head layout
    # dropout(p=0.6) is identity in eval mode

    # block 1 (log_softmax fused into the layer-2 finalize)
    n2 = blk1["adj"].shape[0]
    h2 = gat_layer(h1, blk1["res_n_id"], blk1["adj"], lp2,
                   apply_elu=False, log_softmax_cols=lp2["c_real"])
    return h2[:n2, :lp2["c_real"]]


def _make_block(key, n_src, n_dst, fanout):
    """Synthetic NeighborSampler block: res_n_id, dense int8 adjacency adj[dst, src]."""
    res_n_id = jnp.arange(n_dst, dtype=jnp.int32)
    dst = jnp.repeat(jnp.arange(n_dst, dtype=jnp.int32), fanout + 1)
    self_src = jnp.arange(n_dst, dtype=jnp.int32)[:, None]      # guarantees >=1 edge/dst
    rand_src = jax.random.randint(key, (n_dst, fanout), 0, n_src, dtype=jnp.int32)
    src = jnp.concatenate([self_src, rand_src], axis=1).reshape(-1)
    adj = jnp.zeros((n_dst, n_src), jnp.int8).at[dst, src].set(1)
    return {"res_n_id": res_n_id, "adj": adj}


if __name__ == "__main__":
    key = jax.random.PRNGKey(0)
    k_x, k_nid, k_b0, k_b1, k_p = jax.random.split(key, 5)

    in_channels, out_channels = 16, 7
    n_total, n0, n1, n2 = 32, 24, 12, 4          # global nodes, block sizes

    x = jax.random.normal(k_x, (n_total, in_channels), jnp.float32)
    params = init_params(k_p, in_channels, out_channels)

    blk0 = _make_block(k_b0, n_src=n0, n_dst=n1, fanout=3)
    blk0["n_id"] = jax.random.permutation(k_nid, n_total)[:n0].astype(jnp.int32)
    blk1 = _make_block(k_b1, n_src=n1, n_dst=n2, fanout=3)

    out = gatnet_forward(params, x, (blk0, blk1))
    out = jax.block_until_ready(out)

    assert out.shape == (n2, out_channels)
    assert bool(jnp.all(jnp.isfinite(out)))
    # rows of log_softmax should exp-sum to ~1
    assert bool(jnp.all(jnp.abs(jnp.sum(jnp.exp(out), axis=1) - 1.0) < 1e-4))
    print("KERNEL_OK")
</pallas_src>

<mosaic_0001>
module attributes {stable_mosaic.version = 11 : i64} {
  func.func @_proj_matmul_kernel(%arg0: i32, %arg1: memref<128x128xbf16, #tpu.memory_space<vmem>>, %arg2: memref<128x256xbf16, #tpu.memory_space<vmem>>, %arg3: memref<128x128xbf16, #tpu.memory_space<vmem>>, %arg4: memref<128x16xf32, #tpu.memory_space<vmem>>) attributes {dimension_semantics = [#tpu.dimension_semantics<parallel>], iteration_bounds = array<i64: 1>, scalar_prefetch = 0 : i64, scratch_operands = 0 : i64, tpu.core_type = #tpu.core_type<tc>, window_params = [{transform_indices = @transform_0, window_bounds = array<i64: 128, 128>}, {pipeline_mode = #tpu.pipeline_mode<synchronous>, transform_indices = @transform_1, window_bounds = array<i64: 128, 256>}, {transform_indices = @transform_2, window_bounds = array<i64: 128, 128>}, {transform_indices = @transform_3, window_bounds = array<i64: 128, 16>}]} {
    %c0 = arith.constant 0 : index
    %c0_0 = arith.constant 0 : index
    %0 = vector.load %arg1[%c0, %c0_0] : memref<128x128xbf16, #tpu.memory_space<vmem>>, vector<128x128xbf16>
    %c0_1 = arith.constant 0 : index
    %c0_2 = arith.constant 0 : index
    %1 = vector.load %arg2[%c0_1, %c0_2] : memref<128x256xbf16, #tpu.memory_space<vmem>>, vector<128x256xbf16>
    %cst = arith.constant dense<0.000000e+00> : vector<128x256xf32>
    %2 = tpu.matmul %0, %1, %cst {dimension_numbers = #tpu.dot_dimension_numbers<[1], [0], [0], [1], [0, 0, 1, 1], [], []>} : vector<128x128xbf16>, vector<128x256xbf16>, vector<128x256xf32> -> vector<128x256xf32>
    %3 = vector.extract_strided_slice %2 {offsets = [0, 0], sizes = [128, 128], strides = [1, 1]} : vector<128x256xf32> to vector<128x128xf32>
    %4 = arith.truncf %3 : vector<128x128xf32> to vector<128x128xbf16>
    %c0_3 = arith.constant 0 : index
    %c0_4 = arith.constant 0 : index
    %5 = vector.load %arg3[%c0_3, %c0_4] : memref<128x128xbf16, #tpu.memory_space<vmem>>, vector<128x128xbf16>
    tpu.vector_store %arg3[%c0_3, %c0_4], %4 {strides = array<i32>} : memref<128x128xbf16, #tpu.memory_space<vmem>>, vector<128x128xbf16>,
    %6 = vector.extract_strided_slice %2 {offsets = [0, 128], sizes = [128, 16], strides = [1, 1]} : vector<128x256xf32> to vector<128x16xf32>
    %c0_5 = arith.constant 0 : index
    %c0_6 = arith.constant 0 : index
    %7 = vector.load %arg4[%c0_5, %c0_6] : memref<128x16xf32, #tpu.memory_space<vmem>>, vector<128x16xf32>
    tpu.vector_store %arg4[%c0_5, %c0_6], %6 {strides = array<i32>} : memref<128x16xf32, #tpu.memory_space<vmem>>, vector<128x16xf32>,
    return
  }
  func.func @transform_0(%arg0: i32) -> (i32, i32) {
    %c0_i32 = arith.constant 0 : i32
    %c0_i32_0 = arith.constant 0 : i32
    return %arg0, %c0_i32 : i32, i32
  }
  func.func @transform_1(%arg0: i32) -> (i32, i32) {
    %c0_i32 = arith.constant 0 : i32
    %c0_i32_0 = arith.constant 0 : i32
    %c0_i32_1 = arith.constant 0 : i32
    return %c0_i32, %c0_i32_0 : i32, i32
  }
  func.func @transform_2(%arg0: i32) -> (i32, i32) {
    %c0_i32 = arith.constant 0 : i32
    %c0_i32_0 = arith.constant 0 : i32
    return %arg0, %c0_i32 : i32, i32
  }
  func.func @transform_3(%arg0: i32) -> (i32, i32) {
    %c0_i32 = arith.constant 0 : i32
    %c0_i32_0 = arith.constant 0 : i32
    return %arg0, %c0_i32 : i32, i32
  }
}

</mosaic_0001>

<bundles_post_ra>
// kernel: tpu_custom_call.1
= control target key start
LH: loop header
LB: loop body
LE: loop exit
PB: predicated region body
PF: predicated region fallthrough
CT: control target
= control target key end

     0   :  { %9 = vsyncpa [#allocation3], 0  ;;  %s775_s0 = inlined_call_operand.hbm [shape: bf16[128,128], index: 0, kind: input, shape index: {}]   ;;  %s776_s1 = inlined_call_operand.hbm [shape: bf16[128,256], index: 1, kind: input, shape index: {}]   ;;  %s777_s2 = inlined_call_operand.hbm [shape: bf16[128,128], index: 2, kind: output, shape index: {0}]   ;;  %s778_s3 = inlined_call_operand.vmem [shape: f32[128,16], index: 3, kind: output, shape index: {1}]  }
   0x1   :  { %10 = vsyncpa [#allocation6], 0 }
   0x2   :  { %11 = vsyncpa [#allocation4], 0  ;;  %s660_s12 = smov [#allocation2]  }
   0x3   :  { %s17_s13 = sshll.u32 %s660_s12, 4  ;;  %s18_s13 = int_to_ptr.vmem [resolvable:$true] %s17_s13 }
   0x4   :  { %s602_s14 = scalar_lea.vmem %s18_s13, 1024  ;;  %p607_p1 = scmp.lt.s32.totalorder %s18_s13, %s18_s13 }
   0x5   :  { %p603_p0 = scmp.ne.s32.totalorder %s18_s13, %s602_s14  ;;  %p608_p2 = scmp.lt.s32.totalorder %s602_s14, %s602_s14 }
   0x7   :  { %p609_p3 = por %p608_p2, %p607_p1 }
   0x9   :  { %p610_p4 = pnand %p609_p3, %p603_p0 }
   0xb   :  { %613 = shalt.err (!%p610_p4)
}
   0xc   :  { %s661_s15 = smov 64   ;;  %s662_s16 = smov 4  }
   0xd   :  { %23 = dma.hbm_to_vmem [thread:$0]  %s775_s0, 1024, %s18_s13, [#allocation3], %s661_s15, %s661_s15, %s662_s16  }
   0xe   :  { %s663_s19 = smov [#allocation5]  }
   0xf   :  { %s29_s20 = sshll.u32 %s663_s19, 4  ;;  %s30_s20 = int_to_ptr.vmem [resolvable:$true] %s29_s20 }
  0x10   :  { %s622_s21 = scalar_lea.vmem %s30_s20, 2048  ;;  %p627_p6 = scmp.lt.s32.totalorder %s30_s20, %s30_s20 }
  0x11   :  { %p623_p5 = scmp.ne.s32.totalorder %s30_s20, %s622_s21  ;;  %p628_p7 = scmp.lt.s32.totalorder %s622_s21, %s622_s21 }
  0x13   :  { %p629_p8 = por %p628_p7, %p627_p6 }
  0x15   :  { %p630_p9 = pnand %p629_p8, %p623_p5 }
  0x17   :  { %633 = shalt.err (!%p630_p9)
}
  0x18   :  { %s664_s22 = smov 128   ;;  %s665_s23 = smov 8  }
  0x19   :  { %35 = dma.hbm_to_vmem [thread:$0]  %s776_s1, 2048, %s30_s20, [#allocation6], %s664_s22, %s664_s22, %s665_s23  }
  0x1a   :  { %654 = dma.done.wait [#allocation3], 1024  }
  0x1b   :  { %655 = vsyncadd [#allocation3], 4294966272 }
  0x1c   :  { %656 = dma.done.wait [#allocation6], 2048  }
  0x1d   :  { %657 = vsyncadd [#allocation6], 4294965248  ;;  %v666_v0 = vmov 0   ;;  %v562_v1 = vld [vmem:[#allocation5 + $0x74] ss:$8 sps:$4 sm:$0xff]   ;;  %v586_v17 = vld [vmem:[#allocation2] sm:$0xff]  }
  0x1e   :  { %235 = vmatprep.mubr.bf16.mxu0 %v666_v0  ;;  %275 = vmatprep.mubr.bf16.mxu1 %v666_v0  ;;  %v564_v2 = vld [vmem:[#allocation5 + $0x70] ss:$8 sps:$4 sm:$0xff]   ;;  %v565_v3 = vld [vmem:[#allocation5 + $0x64] ss:$8 sps:$4 sm:$0xff]   ;;  %v567_v4 = vld [vmem:[#allocation5 + $0x60] ss:$8 sps:$4 sm:$0xff]  }
  0x1f   :  { %203 = vmatprep.subr.bf16.mxu0 %v562_v1  ;;  %538 = vmatprep.subr.bf16.mxu1 %v562_v1  ;;  %v568_v5 = vld [vmem:[#allocation5 + $0x54] ss:$8 sps:$4 sm:$0xff]   ;;  %v570_v6 = vld [vmem:[#allocation5 + $0x50] ss:$8 sps:$4 sm:$0xff]   ;;  %v571_v7 = vld [vmem:[#allocation5 + $0x44] ss:$8 sps:$4 sm:$0xff]  }
  0x20   :  { %204 = vmatpush1.bf16.msra.mxu0 %v564_v2  ;;  %546 = vmatpush1.bf16.msra.mxu1 %v564_v2  ;;  %v573_v8 = vld [vmem:[#allocation5 + $0x40] ss:$8 sps:$4 sm:$0xff]   ;;  %v574_v9 = vld [vmem:[#allocation5 + $0x34] ss:$8 sps:$4 sm:$0xff]   ;;  %v576_v10 = vld [vmem:[#allocation5 + $0x30] ss:$8 sps:$4 sm:$0xff]  }
  0x21   :  { %205 = vmatprep.subr.bf16.mxu0 %v565_v3  ;;  %539 = vmatprep.subr.bf16.mxu1 %v565_v3  ;;  %v577_v11 = vld [vmem:[#allocation5 + $0x24] ss:$8 sps:$4 sm:$0xff]   ;;  %v579_v12 = vld [vmem:[#allocation5 + $0x20] ss:$8 sps:$4 sm:$0xff]   ;;  %v580_v13 = vld [vmem:[#allocation5 + $0x14] ss:$8 sps:$4 sm:$0xff]  }
  0x22   :  { %v582_v14 = vld [vmem:[#allocation5 + $0x10] ss:$8 sps:$4 sm:$0xff]   ;;  %v583_v15 = vld [vmem:[#allocation5 + $0x4] ss:$8 sps:$4 sm:$0xff]   ;;  %v585_v16 = vld [vmem:[#allocation5] ss:$8 sps:$4 sm:$0xff]  }
  0x23   :  { %v587_v18 = vld [vmem:[#allocation2 + $0x20] sm:$0xff]   ;;  %v588_v19 = vld [vmem:[#allocation2 + $0x8] sm:$0xff]   ;;  %v590_v21 = vld [vmem:[#allocation2 + $0x10] sm:$0xff]   ;;  %vm396_vm0 = vcmask 130048   ;;  %s667_s23 = smov [#allocation7]  }
  0x24   :  { %206 = vmatpush1.bf16.msra.mxu0 %v567_v4  ;;  %547 = vmatpush1.bf16.msra.mxu1 %v567_v4  ;;  %v589_v20 = vld [vmem:[#allocation2 + $0x28] sm:$0xff]   ;;  %v591_v22 = vld [vmem:[#allocation2 + $0x30] sm:$0xff]   ;;  %v592_v23 = vld [vmem:[#allocation2 + $0x18] sm:$0xff]   ;;  %s418_s24 = sshll.u32 %s667_s23, 4  ;;  %s419_s24 = int_to_ptr.vmem [resolvable:$true] %s418_s24 }
  0x25   :  { %207 = vmatprep.subr.bf16.mxu0 %v568_v5  ;;  %540 = vmatprep.subr.bf16.mxu1 %v568_v5  ;;  %v593_v24 = vld [vmem:[#allocation2 + $0x38] sm:$0xff]   ;;  %s634_s4 = scalar_lea.vmem %s419_s24, 1024  ;;  %p639_p11 = scmp.lt.s32.totalorder %s419_s24, %s419_s24 }
  0x26   :  { %p635_p10 = scmp.ne.s32.totalorder %s419_s24, %s634_s4  ;;  %p640_p12 = scmp.lt.s32.totalorder %s634_s4, %s634_s4 }
  0x28   :  { %208 = vmatpush1.bf16.msra.mxu0 %v570_v6  ;;  %548 = vmatpush1.bf16.msra.mxu1 %v570_v6  ;;  %p641_p13 = por %p640_p12, %p639_p11 }
  0x29   :  { %209 = vmatprep.subr.bf16.mxu0 %v571_v7  ;;  %541 = vmatprep.subr.bf16.mxu1 %v571_v7 }
  0x2a   :  { %p642_p0 = pnand %p641_p13, %p635_p10 }
  0x2c   :  { %210 = vmatpush1.bf16.msra.mxu0 %v573_v8  ;;  %549 = vmatpush1.bf16.msra.mxu1 %v573_v8 }
  0x2d   :  { %211 = vmatprep.subr.bf16.mxu0 %v574_v9  ;;  %542 = vmatprep.subr.bf16.mxu1 %v574_v9 }
  0x30   :  { %212 = vmatpush1.bf16.msra.mxu0 %v576_v10  ;;  %550 = vmatpush1.bf16.msra.mxu1 %v576_v10 }
  0x31   :  { %213 = vmatprep.subr.bf16.mxu0 %v577_v11  ;;  %543 = vmatprep.subr.bf16.mxu1 %v577_v11 }
  0x34   :  { %214 = vmatpush1.bf16.msra.mxu0 %v579_v12  ;;  %551 = vmatpush1.bf16.msra.mxu1 %v579_v12 }
  0x35   :  { %215 = vmatprep.subr.bf16.mxu0 %v580_v13  ;;  %544 = vmatprep.subr.bf16.mxu1 %v580_v13 }
  0x38   :  { %216 = vmatpush1.bf16.msra.mxu0 %v582_v14  ;;  %552 = vmatpush1.bf16.msra.mxu1 %v582_v14 }
  0x39   :  { %217 = vmatprep.subr.bf16.mxu0 %v583_v15  ;;  %545 = vmatprep.subr.bf16.mxu1 %v583_v15 }
  0x3c   :  { %218 = vmatpush1.bf16.msra.mxu0 %v585_v16  ;;  %553 = vmatpush1.bf16.msra.mxu1 %v585_v16 }
  0x3f   :  { %236 = vmatmul.mubr.bf16.vlgmr.msra.gmra.mxu0 %v586_v17  ;;  %276 = vmatmul.mubr.bf16.vlgmr.msra.gmra.mxu1 %v587_v18 }
  0x40   :  { %245 = vmatprep.mubr.bf16.mxu0 %v666_v0  ;;  %285 = vmatprep.mubr.bf16.mxu1 %v666_v0 }
  0x47   :  { %246 = vmatmul.mubr.bf16.gmra.mxu0 %v588_v19  ;;  %286 = vmatmul.mubr.bf16.gmra.mxu1 %v589_v20 }
  0x48   :  { %255 = vmatprep.mubr.bf16.mxu0 %v666_v0  ;;  %295 = vmatprep.mubr.bf16.mxu1 %v666_v0 }
  0x4f   :  { %256 = vmatmul.mubr.bf16.gmra.mxu0 %v590_v21  ;;  %296 = vmatmul.mubr.bf16.gmra.mxu1 %v591_v22 }
  0x50   :  { %265 = vmatprep.mubr.bf16.mxu0 %v666_v0  ;;  %305 = vmatprep.mubr.bf16.mxu1 %v666_v0 }
  0x57   :  { %266 = vmatmul.mubr.bf16.gmra.mxu0 %v592_v23  ;;  %306 = vmatmul.mubr.bf16.gmra.mxu1 %v593_v24 }
  0xff   :  { %v237_v25 = vpop.f32.mrf.mxu0  ;;  %v277_v26 = vpop.f32.mrf.mxu1 }
 0x101   :  { %v239_v27 = vpop.f32.mrf.mxu0  ;;  %v279_v28 = vpop.f32.mrf.mxu1 }
 0x102   :  { %397 = vst.msk [vmem:[%s778_s3] sm:$0xff] %vm396_vm0, %v239_v27  ;;  %405 = vst.msk [vmem:[%s778_s3 + $0x40] sm:$0xff] %vm396_vm0, %v279_v28 }
 0x103   :  { %v241_v29 = vpop.f32.mrf.mxu0  ;;  %v281_v30 = vpop.f32.mrf.mxu1 }
 0x104   :  { %v494_v31 = vpack.c.bf16 %v241_v29, %v237_v25  ;;  %v514_v32 = vpack.c.bf16 %v281_v30, %v277_v26 }
 0x105   :  { %v243_v33 = vpop.f32.mrf.mxu0  ;;  %v283_v34 = vpop.f32.mrf.mxu1 }
 0x106   :  { %495 = vst [vmem:[#allocation7] sm:$0xff] %v494_v31   ;;  %534 = vst [vmem:[#allocation7 + $0x20] sm:$0xff] %v514_v32  }
 0x107   :  { %398 = vst.msk [vmem:[%s778_s3 + $0x8] sm:$0xff] %vm396_vm0, %v243_v33  ;;  %406 = vst.msk [vmem:[%s778_s3 + $0x48] sm:$0xff] %vm396_vm0, %v283_v34  ;;  %v247_v35 = vpop.f32.mrf.mxu0  ;;  %v287_v36 = vpop.f32.mrf.mxu1 }
 0x109   :  { %v249_v37 = vpop.f32.mrf.mxu0  ;;  %v289_v38 = vpop.f32.mrf.mxu1 }
 0x10a   :  { %399 = vst.msk [vmem:[%s778_s3 + $0x10] sm:$0xff] %vm396_vm0, %v249_v37  ;;  %407 = vst.msk [vmem:[%s778_s3 + $0x50] sm:$0xff] %vm396_vm0, %v289_v38 }
 0x10b   :  { %v251_v39 = vpop.f32.mrf.mxu0  ;;  %v291_v40 = vpop.f32.mrf.mxu1 }
 0x10c   :  { %v499_v41 = vpack.c.bf16 %v251_v39, %v247_v35  ;;  %v519_v42 = vpack.c.bf16 %v291_v40, %v287_v36 }
 0x10d   :  { %v253_v43 = vpop.f32.mrf.mxu0  ;;  %v293_v44 = vpop.f32.mrf.mxu1 }
 0x10e   :  { %531 = vst [vmem:[#allocation7 + $0x8] sm:$0xff] %v499_v41   ;;  %535 = vst [vmem:[#allocation7 + $0x28] sm:$0xff] %v519_v42  }
 0x10f   :  { %400 = vst.msk [vmem:[%s778_s3 + $0x18] sm:$0xff] %vm396_vm0, %v253_v43  ;;  %408 = vst.msk [vmem:[%s778_s3 + $0x58] sm:$0xff] %vm396_vm0, %v293_v44  ;;  %v257_v45 = vpop.f32.mrf.mxu0  ;;  %v297_v46 = vpop.f32.mrf.mxu1 }
 0x111   :  { %v259_v47 = vpop.f32.mrf.mxu0  ;;  %v299_v48 = vpop.f32.mrf.mxu1 }
 0x112   :  { %401 = vst.msk [vmem:[%s778_s3 + $0x20] sm:$0xff] %vm396_vm0, %v259_v47  ;;  %409 = vst.msk [vmem:[%s778_s3 + $0x60] sm:$0xff] %vm396_vm0, %v299_v48 }
 0x113   :  { %v261_v49 = vpop.f32.mrf.mxu0  ;;  %v301_v50 = vpop.f32.mrf.mxu1 }
 0x114   :  { %v504_v51 = vpack.c.bf16 %v261_v49, %v257_v45  ;;  %v524_v52 = vpack.c.bf16 %v301_v50, %v297_v46 }
 0x115   :  { %v263_v53 = vpop.f32.mrf.mxu0  ;;  %v303_v54 = vpop.f32.mrf.mxu1 }
 0x116   :  { %532 = vst [vmem:[#allocation7 + $0x10] sm:$0xff] %v504_v51   ;;  %536 = vst [vmem:[#allocation7 + $0x30] sm:$0xff] %v524_v52  }
 0x117   :  { %402 = vst.msk [vmem:[%s778_s3 + $0x28] sm:$0xff] %vm396_vm0, %v263_v53  ;;  %410 = vst.msk [vmem:[%s778_s3 + $0x68] sm:$0xff] %vm396_vm0, %v303_v54  ;;  %v267_v55 = vpop.f32.mrf.mxu0  ;;  %v307_v56 = vpop.f32.mrf.mxu1 }
 0x119   :  { %v269_v57 = vpop.f32.mrf.mxu0  ;;  %v309_v58 = vpop.f32.mrf.mxu1 }
 0x11a   :  { %403 = vst.msk [vmem:[%s778_s3 + $0x30] sm:$0xff] %vm396_vm0, %v269_v57  ;;  %411 = vst.msk [vmem:[%s778_s3 + $0x70] sm:$0xff] %vm396_vm0, %v309_v58 }
 0x11b   :  { %v271_v59 = vpop.f32.mrf.mxu0  ;;  %v311_v60 = vpop.f32.mrf.mxu1 }
 0x11c   :  { %v509_v61 = vpack.c.bf16 %v271_v59, %v267_v55  ;;  %v529_v62 = vpack.c.bf16 %v311_v60, %v307_v56 }
 0x11d   :  { %v273_v63 = vpop.f32.mrf.mxu0  ;;  %v313_v0 = vpop.f32.mrf.mxu1 }
 0x11e   :  { %533 = vst [vmem:[#allocation7 + $0x18] sm:$0xff] %v509_v61   ;;  %537 = vst [vmem:[#allocation7 + $0x38] sm:$0xff] %v529_v62  }
 0x11f   :  { %404 = vst.msk [vmem:[%s778_s3 + $0x38] sm:$0xff] %vm396_vm0, %v273_v63  ;;  %412 = vst.msk [vmem:[%s778_s3 + $0x78] sm:$0xff] %vm396_vm0, %v313_v0 }
 0x120   :  { %645 = shalt.err (!%p642_p0)
}
 0x121   :  { %424 = dma.vmem_to_hbm [thread:$0]  %s419_s24, 1024, %s777_s2, [#allocation4], %s661_s15, %s661_s15, %s662_s16  }
 0x122   :  { %658 = dma.done.wait [#allocation4], 1024  }
 0x123   :  { %659 = vsyncadd [#allocation4], 4294966272 }
 0x124   :  { %432 = vsyncpa [#allocation3], 1 }
 0x125   :  { %433 = vsyncpa [#allocation6], 1 }
 0x126   :  { %434 = vsyncpa [#allocation4], 1 }

</bundles_post_ra>
